<compile_context>
chip_gen: v7x
topology: tpu7x:2x2x1
jax: 0.10.0
libtpu: 0.0.40
codegen_flags: <defaults>
</compile_context>

<pallas_src>
import functools
import math

import jax
import jax.numpy as jnp
from jax.experimental import pallas as pl
from jax.experimental.pallas import tpu as pltpu


_VMEM_LIMIT = 32 * 1024 * 1024  # safe on v5e/v6e/v7x; raises v5e's 16MiB default


def _cparams(n_axes=1):
    return pltpu.CompilerParams(
        dimension_semantics=("parallel",) * n_axes,
        vmem_limit_bytes=_VMEM_LIMIT)


# ----------------------------- Pallas kernels ------------------------------

def _linear_kernel(*refs, act, has_res, scale):
    x_ref, w_ref, b_ref = refs[0], refs[1], refs[2]
    res_ref = refs[3] if has_res else None
    o_ref = refs[-1]
    y = jnp.dot(x_ref[...], w_ref[...], preferred_element_type=jnp.float32)
    y = y + b_ref[...]
    if act:                                   # fused SiLU epilogue (f32)
        y = y * jax.nn.sigmoid(y)
    if has_res:                               # fused residual add
        y = y + res_ref[...].astype(jnp.float32)
    if scale is not None:                     # fused 1/sqrt(2) scale
        y = y * scale
    o_ref[...] = y.astype(o_ref.dtype)


def pallas_linear(x, w, b, *, act=False, residual=None, scale=None,
                  out_dtype=jnp.bfloat16):
    """x:(M,K) @ w:(K,N) + b. Optional fused SiLU / residual add / scale."""
    M, K = x.shape
    N = w.shape[1]
    tm = M if M <= 256 else 256               # M-tiled "parallel" grid axis
    Mp = ((M + tm - 1) // tm) * tm
    x = x.astype(jnp.bfloat16)
    res = residual
    if Mp != M:
        x = jnp.pad(x, ((0, Mp - M), (0, 0)))
        if res is not None:
            res = jnp.pad(res, ((0, Mp - M), (0, 0)))
    args = [x, w, b.reshape(1, N).astype(jnp.float32)]
    in_specs = [pl.BlockSpec((tm, K), lambda i: (i, 0)),
                pl.BlockSpec((K, N), lambda i: (0, 0)),
                pl.BlockSpec((1, N), lambda i: (0, 0))]
    has_res = res is not None
    if has_res:
        args.append(res)
        in_specs.append(pl.BlockSpec((tm, N), lambda i: (i, 0)))
    out = pl.pallas_call(
        functools.partial(_linear_kernel, act=act, has_res=has_res, scale=scale),
        out_shape=jax.ShapeDtypeStruct((Mp, N), out_dtype),
        grid=(Mp // tm,),
        in_specs=in_specs,
        out_specs=pl.BlockSpec((tm, N), lambda i: (i, 0)),
        compiler_params=_cparams(1),
    )(*args)
    return out[:M] if Mp != M else out


def _conv3x3_kernel(*refs, H, W, Cin, has_sbias, has_res, scale):
    xp_ref, w_ref, b_ref = refs[0], refs[1], refs[2]
    idx = 3
    sb_ref = None
    if has_sbias:
        sb_ref = refs[idx]; idx += 1
    res_ref = None
    if has_res:
        res_ref = refs[idx]; idx += 1
    o_ref = refs[idx]

    # Build the 9 shifted taps in VMEM from the halo-padded sample and fold
    # them into the contraction dim: one (HW, 9*Cin) @ (9*Cin, Cout) matmul.
    xp = xp_ref[0].astype(jnp.float32)                       # (H+2, W+2, Cin)
    taps = [xp[dy:dy + H, dx:dx + W, :] for dy in range(3) for dx in range(3)]
    xt = jnp.concatenate(taps, axis=-1).reshape(H * W, 9 * Cin)
    acc = jnp.dot(xt.astype(jnp.bfloat16), w_ref[...],
                  preferred_element_type=jnp.float32)        # (HW, Cout)
    acc = acc + b_ref[...]
    if has_sbias:                             # per-sample time-embedding bias
        acc = acc + sb_ref[0].astype(jnp.float32)
    if has_res:                               # fused skip/residual add
        acc = acc + res_ref[0].astype(jnp.float32)
    if scale is not None:                     # fused 1/sqrt(2) scale
        acc = acc * scale
    o_ref[0] = acc.astype(o_ref.dtype)


def pallas_conv3x3(x, w, b, *, sample_bias=None, residual=None, scale=None,
                   out_dtype=jnp.bfloat16):
    """3x3 conv, stride 1, pad 1, NHWC.  w is pre-reshaped to (9*Cin, Cout).

    Fused epilogue: y = (conv(x) + b [+ sample_bias] [+ residual]) [* scale]
    """
    B, H, W_, Cin = x.shape
    Cout = w.shape[1]
    assert w.shape[0] == 9 * Cin
    HW = H * W_
    xp = jnp.pad(x.astype(jnp.bfloat16), ((0, 0), (1, 1), (1, 1), (0, 0)))
    args = [xp, w, b.reshape(1, Cout).astype(jnp.float32)]
    in_specs = [pl.BlockSpec((1, H + 2, W_ + 2, Cin), lambda bb: (bb, 0, 0, 0)),
                pl.BlockSpec((9 * Cin, Cout), lambda bb: (0, 0)),
                pl.BlockSpec((1, Cout), lambda bb: (0, 0))]
    has_sbias = sample_bias is not None
    if has_sbias:
        args.append(sample_bias.reshape(B, 1, Cout))
        in_specs.append(pl.BlockSpec((1, 1, Cout), lambda bb: (bb, 0, 0)))
    has_res = residual is not None
    if has_res:
        args.append(residual.reshape(B, HW, Cout))
        in_specs.append(pl.BlockSpec((1, HW, Cout), lambda bb: (bb, 0, 0)))
    # TODO(synk): add row-tiling (halo'd height tiles) for large resolutions so
    # blocks stay within v7x's 64 MiB VMEM; full-sample blocks are fine here.
    out = pl.pallas_call(
        functools.partial(_conv3x3_kernel, H=H, W=W_, Cin=Cin,
                          has_sbias=has_sbias, has_res=has_res, scale=scale),
        out_shape=jax.ShapeDtypeStruct((B, HW, Cout), out_dtype),
        grid=(B,),
        in_specs=in_specs,
        out_specs=pl.BlockSpec((1, HW, Cout), lambda bb: (bb, 0, 0)),
        compiler_params=_cparams(1),
    )(*args)
    return out.reshape(B, H, W_, Cout)


def _groupnorm_kernel(x_ref, g_ref, b_ref, o_ref, *, groups, eps, act):
    x = x_ref[0].astype(jnp.float32)                         # (T, C)
    T, C = x.shape
    cg = C // groups
    n = float(T * cg)
    # channel -> group one-hot built in-kernel (no extra DMA'd matrices)
    ch = jax.lax.broadcasted_iota(jnp.int32, (C, groups), 0)
    gp = jax.lax.broadcasted_iota(jnp.int32, (C, groups), 1)
    onehot = (ch // cg == gp).astype(jnp.float32)            # (C, G)
    # two-pass mean / centered variance (avoids E[x^2]-E[x]^2 cancellation)
    s = jnp.sum(x, axis=0, keepdims=True)                    # (1, C)
    mean_g = jnp.dot(s, onehot, preferred_element_type=jnp.float32) / n
    mean_c = jax.lax.dot_general(mean_g, onehot, (((1,), (1,)), ((), ())),
                                 preferred_element_type=jnp.float32)   # (1, C)
    d = x - mean_c
    ss = jnp.sum(d * d, axis=0, keepdims=True)
    var_g = jnp.dot(ss, onehot, preferred_element_type=jnp.float32) / n
    inv_g = jax.lax.rsqrt(var_g + eps)
    inv_c = jax.lax.dot_general(inv_g, onehot, (((1,), (1,)), ((), ())),
                                preferred_element_type=jnp.float32)
    y = d * inv_c * g_ref[...] + b_ref[...]
    if act:                                   # fused SiLU
        y = y * jax.nn.sigmoid(y)
    o_ref[0] = y.astype(o_ref.dtype)


def pallas_group_norm(x, gamma, beta, groups, act=False, eps=1e-6,
                      out_dtype=jnp.bfloat16):
    """GroupNorm over (T, C/groups) per sample. x:(B,T,C) -> (B,T,C)."""
    B, T, C = x.shape
    # TODO(synk): tile T with accumulator scratch for large resolutions (v7x VMEM).
    return pl.pallas_call(
        functools.partial(_groupnorm_kernel, groups=groups, eps=eps, act=act),
        out_shape=jax.ShapeDtypeStruct((B, T, C), out_dtype),
        grid=(B,),
        in_specs=[pl.BlockSpec((1, T, C), lambda bb: (bb, 0, 0)),
                  pl.BlockSpec((1, C), lambda bb: (0, 0)),
                  pl.BlockSpec((1, C), lambda bb: (0, 0))],
        out_specs=pl.BlockSpec((1, T, C), lambda bb: (bb, 0, 0)),
        compiler_params=_cparams(1),
    )(x, gamma.reshape(1, C).astype(jnp.float32),
      beta.reshape(1, C).astype(jnp.float32))


def _attention_kernel(q_ref, k_ref, v_ref, o_ref, *, sm_scale):
    q, k, v = q_ref[0], k_ref[0], v_ref[0]                   # (T, C) bf16
    s = jax.lax.dot_general(q, k, (((1,), (1,)), ((), ())),
                            preferred_element_type=jnp.float32) * sm_scale
    s = s - jnp.max(s, axis=-1, keepdims=True)               # softmax in f32
    p = jnp.exp(s)
    p = p / jnp.sum(p, axis=-1, keepdims=True)
    o = jnp.dot(p.astype(v.dtype), v, preferred_element_type=jnp.float32)
    o_ref[0] = o.astype(o_ref.dtype)


def pallas_attention(q, k, v):
    """q,k,v: (BH, T, C) -> softmax(q k^T / sqrt(C)) v, shape (BH, T, C)."""
    BH, T, C = q.shape
    sm_scale = 1.0 / math.sqrt(C)   # == (C**-0.25 applied to q and to k)
    # TODO(synk): switch to K-tiled online-softmax (flash) if T grows >= 1024.
    return pl.pallas_call(
        functools.partial(_attention_kernel, sm_scale=sm_scale),
        out_shape=jax.ShapeDtypeStruct((BH, T, C), jnp.bfloat16),
        grid=(BH,),
        in_specs=[pl.BlockSpec((1, T, C), lambda bb: (bb, 0, 0))] * 3,
        out_specs=pl.BlockSpec((1, T, C), lambda bb: (bb, 0, 0)),
        compiler_params=_cparams(1),
    )(q.astype(jnp.bfloat16), k.astype(jnp.bfloat16), v.astype(jnp.bfloat16))


# ------------------------------ JAX glue ops --------------------------------

# TODO(synk): resample ops could be folded into the adjacent conv's index_map
# (stride-2 read / row-duplicating read) to save one activation pass each.
def avg_pool2(x):                     # AvgPool2d(2) in NHWC
    B, H, W, C = x.shape
    return x.reshape(B, H // 2, 2, W // 2, 2, C).mean(axis=(2, 4))


def upsample2(x):                     # nearest-neighbor x2 in NHWC
    return jnp.repeat(jnp.repeat(x, 2, axis=1), 2, axis=2)


def gn_nhwc(x, p, groups, act=False):
    B, H, W, C = x.shape
    y = pallas_group_norm(x.reshape(B, H * W, C), p["gamma"], p["beta"],
                          groups, act=act)
    return y.reshape(B, H, W, C)


# --------------------------- parameter builders ------------------------------

def _conv3x3_p(key, cin, cout):
    kw, kb = jax.random.split(key)
    w = jax.random.normal(kw, (3, 3, cin, cout), jnp.float32) * (0.1 / math.sqrt(cin))
    return {"w": w.reshape(9 * cin, cout).astype(jnp.bfloat16),
            "b": jax.random.normal(kb, (cout,), jnp.float32) * 0.01}


def _linear_p(key, cin, cout):
    kw, kb = jax.random.split(key)
    return {"w": (jax.random.normal(kw, (cin, cout), jnp.float32)
                  * (1.0 / math.sqrt(cin))).astype(jnp.bfloat16),
            "b": jax.random.normal(kb, (cout,), jnp.float32) * 0.01}


def _gn_p(c):
    return {"gamma": jnp.ones((c,), jnp.float32),
            "beta": jnp.zeros((c,), jnp.float32)}


def build_ncsnpp(key, *, in_channels, ch, ch_mult, num_res_blocks, resolution,
                 attn_resolutions, num_heads=1, fourier_scale=16.0,
                 scale_by_sqrt2=True):
    keys = iter(jax.random.split(key, 512))
    nk = lambda: next(keys)
    emb_dim = 4 * ch
    num_resolutions = len(ch_mult)

    def resblock(in_ch, out_ch=None, up=False, down=False):
        out_ch = out_ch if out_ch is not None else in_ch
        return {
            "type": "res", "in_ch": in_ch, "out_ch": out_ch,
            # NOTE: out-GroupNorm group count derived from in_ch, matching the
            # reference (nn.GroupNorm(min(in_ch//4,32), num_channels=out_ch)).
            "g_in": min(in_ch // 4, 32), "g_out": min(in_ch // 4, 32),
            "up": up, "down": down,
            "gn_in": _gn_p(in_ch),
            "conv1": _conv3x3_p(nk(), in_ch, out_ch),
            "emb": _linear_p(nk(), emb_dim, out_ch),
            "gn_out": _gn_p(out_ch),
            # zero_module in reference -> synthetic random weights here
            "conv2": _conv3x3_p(nk(), out_ch, out_ch),
            "skip": _conv3x3_p(nk(), in_ch, out_ch) if in_ch != out_ch else None,
        }

    def attnblock(c):
        return {
            "type": "attn", "c": c, "groups": min(c // 4, 32), "heads": num_heads,
            "gn": _gn_p(c),
            "qkv": _linear_p(nk(), c, 3 * c),
            "proj": _linear_p(nk(), c, c),   # zero_module in reference
        }

    params = {
        "fourier_W": jax.random.normal(nk(), (ch,), jnp.float32) * fourier_scale,
        "t_lin1": _linear_p(nk(), 2 * ch, 4 * ch),
        "t_lin2": _linear_p(nk(), 4 * ch, 4 * ch),
        "conv_in": _conv3x3_p(nk(), in_channels, ch),
    }

    down = []
    current_res = resolution
    in_c = ch
    h_channels = [ch]
    for level in range(num_resolutions):
        uses_attn = current_res in attn_resolutions
        out_c = ch * ch_mult[level]
        main = []
        for _ in range(num_res_blocks):
            main.append(resblock(in_c, out_c))
            if uses_attn:
                main.append(attnblock(out_c))
            h_channels.append(out_c)
            in_c = out_c
        stage = {"main": main, "downsample": None}
        if level != num_resolutions - 1:
            stage["downsample"] = resblock(in_c, down=True)
            current_res //= 2
            h_channels.append(in_c)
        down.append(stage)
    params["down"] = down

    params["mid"] = [resblock(in_c), attnblock(in_c), resblock(in_c)]

    up = []
    for level in reversed(range(num_resolutions)):
        uses_attn = current_res in attn_resolutions
        out_c = ch * ch_mult[level]
        main = []
        for _ in range(num_res_blocks + 1):
            main.append(resblock(in_c + h_channels.pop(), out_c))
            if uses_attn:
                main.append(attnblock(out_c))
            in_c = out_c
        stage = {"main": main, "upsample": None}
        if level != 0:
            stage["upsample"] = resblock(in_c, up=True)
            current_res *= 2
        up.append(stage)
    assert not h_channels
    params["up"] = up

    params["gn_out"] = _gn_p(in_c)
    params["conv_out"] = _conv3x3_p(nk(), in_c, in_channels)  # zero_module in ref
    params["meta"] = {"ch": ch, "scale_by_sqrt2": scale_by_sqrt2}
    return params


# ------------------------------ block forwards -------------------------------

def resblock_fwd(p, x, emb_act, scale_by_sqrt2):
    """BigGAN residual block (use_adaptive_group_norm=False). x: NHWC bf16."""
    h = gn_nhwc(x, p["gn_in"], p["g_in"], act=True)          # GN + SiLU (fused)
    if p["up"] or p["down"]:
        resample = upsample2 if p["up"] else avg_pool2
        h = resample(h)
        x = resample(x)
    emb_out = pallas_linear(emb_act, p["emb"]["w"], p["emb"]["b"])   # (B, out_ch)
    # conv1 with fused per-sample time-embedding bias (h = conv(h) + emb_out)
    h = pallas_conv3x3(h, p["conv1"]["w"], p["conv1"]["b"], sample_bias=emb_out)
    h = gn_nhwc(h, p["gn_out"], p["g_out"], act=True)
    # TODO(synk): dropout omitted (p=0.0 in this configuration)
    skip = x if p["skip"] is None else pallas_conv3x3(x, p["skip"]["w"], p["skip"]["b"])
    scale = (1.0 / math.sqrt(2.0)) if scale_by_sqrt2 else None
    # conv2 with fused residual add + 1/sqrt(2) scale in the epilogue
    return pallas_conv3x3(h, p["conv2"]["w"], p["conv2"]["b"],
                          residual=skip, scale=scale)


def attnblock_fwd(p, x, scale_by_sqrt2):
    B, H, W, C = x.shape
    T = H * W
    heads = p["heads"]
    cph = C // heads
    xf = x.reshape(B, T, C)
    xn = pallas_group_norm(xf, p["gn"]["gamma"], p["gn"]["beta"], p["groups"])
    qkv = pallas_linear(xn.reshape(B * T, C), p["qkv"]["w"], p["qkv"]["b"])
    qkv = qkv.reshape(B, T, heads, 3 * cph)
    q, k, v = jnp.split(qkv, 3, axis=-1)          # each (B, T, heads, cph)

    def to_bh(a):
        return a.transpose(0, 2, 1, 3).reshape(B * heads, T, cph)

    h = pallas_attention(to_bh(q), to_bh(k), to_bh(v))        # (B*heads, T, cph)
    h = h.reshape(B, heads, T, cph).transpose(0, 2, 1, 3).reshape(B * T, C)
    scale = (1.0 / math.sqrt(2.0)) if scale_by_sqrt2 else None
    # proj linear with fused residual (x) add + scale
    out = pallas_linear(h, p["proj"]["w"], p["proj"]["b"],
                        residual=xf.reshape(B * T, C), scale=scale)
    return out.reshape(B, H, W, C)


# ------------------------------- full forward --------------------------------

def ncsnpp_forward(params, x_nchw, time_cond):
    s2 = params["meta"]["scale_by_sqrt2"]
    x = jnp.transpose(x_nchw, (0, 2, 3, 1)).astype(jnp.bfloat16)  # NCHW -> NHWC
    B = x.shape[0]

    # --- time conditioning: Gaussian Fourier features + 2-layer MLP ---
    x_proj = jnp.log(time_cond)[:, None] * params["fourier_W"][None, :] * (2.0 * math.pi)
    temb = jnp.concatenate([jnp.sin(x_proj), jnp.cos(x_proj)], axis=-1)   # (B, 2ch)
    emb = pallas_linear(temb, params["t_lin1"]["w"], params["t_lin1"]["b"], act=True)
    # 'emb' is only ever consumed through SiLU(emb) (every emb_layers starts with
    # the activation), so the SiLU is fused into the second MLP matmul's epilogue.
    emb_act = pallas_linear(emb, params["t_lin2"]["w"], params["t_lin2"]["b"], act=True)

    # --- input conv ---
    h = pallas_conv3x3(x, params["conv_in"]["w"], params["conv_in"]["b"])
    hs = [h]

    # --- down path ---
    for stage in params["down"]:
        for block in stage["main"]:
            if block["type"] == "attn":
                h = attnblock_fwd(block, h, s2)
            else:
                h = resblock_fwd(block, h, emb_act, s2)
                hs.append(h)
        if stage["downsample"] is not None:
            h = resblock_fwd(stage["downsample"], h, emb_act, s2)
            hs.append(h)

    # --- middle ---
    for block in params["mid"]:
        if block["type"] == "attn":
            h = attnblock_fwd(block, h, s2)
        else:
            h = resblock_fwd(block, h, emb_act, s2)

    # --- up path (with skip concatenation along channels) ---
    for stage in params["up"]:
        for block in stage["main"]:
            if block["type"] == "attn":
                h = attnblock_fwd(block, h, s2)
            else:
                skip = hs.pop()
                h = resblock_fwd(block, jnp.concatenate([h, skip], axis=-1),
                                 emb_act, s2)
        if stage["upsample"] is not None:
            h = resblock_fwd(stage["upsample"], h, emb_act, s2)
    assert not hs

    # --- output head ---
    groups_out = min(h.shape[-1] // 4, 32)
    h = gn_nhwc(h, params["gn_out"], groups_out, act=True)
    # TODO(synk): conv_out has Cout=in_channels (<128 lanes) -> masked stores;
    # a lane-dense restructuring (HW on lanes) is left for a future pass.
    h = pallas_conv3x3(h, params["conv_out"]["w"], params["conv_out"]["b"],
                       out_dtype=jnp.float32)

    # scale_output_by_sigma: Fourier embedding's get_sigmas(t) == t
    h = h / time_cond.reshape(B, 1, 1, 1)
    return jnp.transpose(h, (0, 3, 1, 2))     # NHWC -> NCHW


# ----------------------------------- main ------------------------------------

if __name__ == "__main__":
    key = jax.random.PRNGKey(0)
    kp, kx, kt = jax.random.split(key, 3)

    B, C_IN, RES = 2, 4, 16
    params = build_ncsnpp(
        kp,
        in_channels=C_IN, ch=32, ch_mult=(1, 1), num_res_blocks=1,
        resolution=RES, attn_resolutions=(8,), num_heads=1,
        fourier_scale=16.0, scale_by_sqrt2=True,
    )

    x = jax.random.normal(kx, (B, C_IN, RES, RES), jnp.float32)
    # positive noise scales (needed for log / 1/sigma scaling)
    time_cond = jnp.exp(jax.random.uniform(
        kt, (B,), minval=math.log(0.05), maxval=math.log(10.0)))

    out = ncsnpp_forward(params, x, time_cond)
    out = jax.block_until_ready(out)

    assert out.shape == x.shape, (out.shape, x.shape)
    assert bool(jnp.all(jnp.isfinite(out)))
    print("KERNEL_OK")
</pallas_src>

<mosaic_0001>
module attributes {stable_mosaic.version = 11 : i64} {
  func.func @_linear_kernel(%arg0: i32, %arg1: memref<2x64xbf16, #tpu.memory_space<vmem>>, %arg2: memref<64x128xbf16, #tpu.memory_space<vmem>>, %arg3: memref<1x128xf32, #tpu.memory_space<vmem>>, %arg4: memref<2x128xbf16, #tpu.memory_space<vmem>>) attributes {dimension_semantics = [#tpu.dimension_semantics<parallel>], iteration_bounds = array<i64: 1>, scalar_prefetch = 0 : i64, scratch_operands = 0 : i64, tpu.core_type = #tpu.core_type<tc>, window_params = [{transform_indices = @transform_0, window_bounds = array<i64: 2, 64>}, {pipeline_mode = #tpu.pipeline_mode<synchronous>, transform_indices = @transform_1, window_bounds = array<i64: 64, 128>}, {pipeline_mode = #tpu.pipeline_mode<synchronous>, transform_indices = @transform_2, window_bounds = array<i64: 1, 128>}, {transform_indices = @transform_3, window_bounds = array<i64: 2, 128>}]} {
    %c0 = arith.constant 0 : index
    %c0_0 = arith.constant 0 : index
    %0 = vector.load %arg1[%c0, %c0_0] : memref<2x64xbf16, #tpu.memory_space<vmem>>, vector<2x64xbf16>
    %c0_1 = arith.constant 0 : index
    %c0_2 = arith.constant 0 : index
    %1 = vector.load %arg2[%c0_1, %c0_2] : memref<64x128xbf16, #tpu.memory_space<vmem>>, vector<64x128xbf16>
    %cst = arith.constant dense<0.000000e+00> : vector<2x128xf32>
    %2 = tpu.matmul %0, %1, %cst {dimension_numbers = #tpu.dot_dimension_numbers<[1], [0], [0], [1], [0, 0, 1, 1], [], []>} : vector<2x64xbf16>, vector<64x128xbf16>, vector<2x128xf32> -> vector<2x128xf32>
    %c0_3 = arith.constant 0 : index
    %c0_4 = arith.constant 0 : index
    %3 = vector.load %arg3[%c0_3, %c0_4] : memref<1x128xf32, #tpu.memory_space<vmem>>, vector<1x128xf32>
    %4 = vector.broadcast %3 : vector<1x128xf32> to vector<2x128xf32>
    %5 = arith.addf %2, %4 : vector<2x128xf32>
    %6 = arith.negf %5 : vector<2x128xf32>
    %7 = math.exp %6 : vector<2x128xf32>
    %cst_5 = arith.constant 1.000000e+00 : f32
    %8 = vector.broadcast %cst_5 : f32 to vector<2x128xf32>
    %9 = arith.addf %8, %7 : vector<2x128xf32>
    %10 = arith.divf %8, %9 : vector<2x128xf32>
    %11 = arith.mulf %5, %10 : vector<2x128xf32>
    %12 = arith.truncf %11 : vector<2x128xf32> to vector<2x128xbf16>
    %c0_6 = arith.constant 0 : index
    %c0_7 = arith.constant 0 : index
    %13 = vector.load %arg4[%c0_6, %c0_7] : memref<2x128xbf16, #tpu.memory_space<vmem>>, vector<2x128xbf16>
    tpu.vector_store %arg4[%c0_6, %c0_7], %12 {strides = array<i32>} : memref<2x128xbf16, #tpu.memory_space<vmem>>, vector<2x128xbf16>,
    return
  }
  func.func @transform_0(%arg0: i32) -> (i32, i32) {
    %c0_i32 = arith.constant 0 : i32
    %c0_i32_0 = arith.constant 0 : i32
    return %arg0, %c0_i32 : i32, i32
  }
  func.func @transform_1(%arg0: i32) -> (i32, i32) {
    %c0_i32 = arith.constant 0 : i32
    %c0_i32_0 = arith.constant 0 : i32
    %c0_i32_1 = arith.constant 0 : i32
    return %c0_i32, %c0_i32_0 : i32, i32
  }
  func.func @transform_2(%arg0: i32) -> (i32, i32) {
    %c0_i32 = arith.constant 0 : i32
    %c0_i32_0 = arith.constant 0 : i32
    %c0_i32_1 = arith.constant 0 : i32
    return %c0_i32, %c0_i32_0 : i32, i32
  }
  func.func @transform_3(%arg0: i32) -> (i32, i32) {
    %c0_i32 = arith.constant 0 : i32
    %c0_i32_0 = arith.constant 0 : i32
    return %arg0, %c0_i32 : i32, i32
  }
}

</mosaic_0001>

<bundles_post_ra>
// kernel: tpu_custom_call.1
= control target key start
LH: loop header
LB: loop body
LE: loop exit
PB: predicated region body
PF: predicated region fallthrough
CT: control target
= control target key end

     0   :  { %8 = vsyncpa [#allocation3], 0  ;;  %s335_s0 = inlined_call_operand.hbm [shape: bf16[2,64], index: 0, kind: input, shape index: {}]   ;;  %s336_s1 = inlined_call_operand.hbm [shape: bf16[64,128], index: 1, kind: input, shape index: {}]   ;;  %s337_s2 = inlined_call_operand.vmem [shape: f32[1,128], index: 2, kind: input, shape index: {}]   ;;  %s338_s3 = inlined_call_operand.hbm [shape: bf16[2,128], index: 3, kind: output, shape index: {}]  }
   0x1   :  { %9 = vsyncpa [#allocation6], 0 }
   0x2   :  { %10 = vsyncpa [#allocation4], 0  ;;  %s262_s12 = smov [#allocation2]   ;;  %s263_s14 = smov [#allocation5]  }
   0x3   :  { %s17_s13 = sshll.u32 %s262_s12, 4  ;;  %s26_s15 = sshll.u32 %s263_s14, 4  ;;  %s18_s13 = int_to_ptr.vmem [resolvable:$true] %s17_s13  ;;  %s289_s15 = int_to_ptr.vmem [resolvable:$true] %s26_s15 }
   0x4   :  { %s190_s18 = scalar_lea.hbm %s335_s0, 16 }
   0x5   :  { %p191_p0 = scmp.ne.s32.totalorder %s335_s0, %s190_s18  ;;  %p194_p1 = scmp.lt.u32.totalorder %s190_s18, %s335_s0 }
   0x7   :  { %p196_p2 = pnand %p194_p1, %p191_p0 }
   0x9   :  { %199 = shalt.err (!%p196_p2)
}
   0xa   :  { %s200_s23 = scalar_lea.vmem %s18_s13, 16  ;;  %s204_s24 = scalar_lea.vmem %s18_s13, 32 }
   0xb   :  { %p201_p3 = scmp.ne.s32.totalorder %s18_s13, %s200_s23  ;;  %p205_p4 = scmp.lt.s32.totalorder %s18_s13, %s18_s13 }
   0xc   :  { %p206_p5 = scmp.lt.s32.totalorder %s204_s24, %s200_s23 }
   0xe   :  { %p207_p6 = por %p206_p5, %p205_p4 }
  0x10   :  { %p208_p7 = pnand %p207_p6, %p201_p3 }
  0x12   :  { %211 = shalt.err (!%p208_p7)
}
  0x13   :  { %20 = dma.hbm_to_vmem [thread:$0]  %s335_s0, 16, %s18_s13, [#allocation3]  }
  0x14   :  { %s212_s29 = scalar_lea.hbm %s336_s1, 512 }
  0x15   :  { %p213_p8 = scmp.ne.s32.totalorder %s336_s1, %s212_s29  ;;  %p216_p9 = scmp.lt.u32.totalorder %s212_s29, %s336_s1 }
  0x17   :  { %p218_p10 = pnand %p216_p9, %p213_p8 }
  0x19   :  { %221 = shalt.err (!%p218_p10)
}
  0x1a   :  { %s222_s7 = scalar_lea.vmem %s289_s15, 512  ;;  %p227_p12 = scmp.lt.s32.totalorder %s289_s15, %s289_s15 }
  0x1b   :  { %p223_p11 = scmp.ne.s32.totalorder %s289_s15, %s222_s7  ;;  %p228_p13 = scmp.lt.s32.totalorder %s222_s7, %s222_s7 }
  0x1d   :  { %p229_p0 = por %p228_p13, %p227_p12 }
  0x1f   :  { %p230_p1 = pnand %p229_p0, %p223_p11 }
  0x21   :  { %233 = shalt.err (!%p230_p1)
}
  0x22   :  { %s264_s0 = smov 64   ;;  %s265_s8 = smov 4  }
  0x23   :  { %32 = dma.hbm_to_vmem [thread:$0]  %s336_s1, 512, %s289_s15, [#allocation6], %s264_s0, %s264_s0, %s265_s8  }
  0x24   :  { %256 = dma.done.wait [#allocation3], 16  }
  0x25   :  { %257 = vsyncadd [#allocation3], 4294967280 }
  0x26   :  { %258 = dma.done.wait [#allocation6], 512  }
  0x27   :  { %259 = vsyncadd [#allocation6], 4294966784  ;;  %v266_v0 = vmov 0.0   ;;  %vm267_vm0 = vmmov 0   ;;  %v182_v1 = vld [vmem:[#allocation5] sm:$0xff]   ;;  %v183_v2 = vld [vmem:[#allocation5 + $0x8] sm:$0xff]  }
  0x28   :  { %163 = vmatprep.subr.bf16.mxu0 %v266_v0  ;;  %171 = vmatprep.mubr.msk.bf16.mxu0 %vm267_vm0, %v266_v0  ;;  %v184_v3 = vld [vmem:[#allocation5 + $0x10] sm:$0xff]   ;;  %v185_v4 = vld [vmem:[#allocation5 + $0x18] sm:$0xff]   ;;  %vm82_vm1 = vcmask 523264   ;;  %s268_s12 = smov [#allocation7]  }
  0x29   :  { %164 = vmatpush3.bf16.msra.mxu0 %v182_v1  ;;  %v42_v5 = vld [vmem:[#allocation2] sm:$0x1]  ;;  %s141_s13 = sshll.u32 %s268_s12, 4  ;;  %s142_s13 = int_to_ptr.vmem [resolvable:$true] %s141_s13 }
  0x2a   :  { %165 = vmatprep.subr.bf16.mxu0 %v266_v0  ;;  %v151_v6 = vld [vmem:[%s337_s2] ss:$0 sm:$0xff]  ;;  %s234_s14 = scalar_lea.vmem %s142_s13, 16  ;;  %s238_s2 = scalar_lea.vmem %s142_s13, 32 }
  0x2b   :  { %p235_p2 = scmp.ne.s32.totalorder %s142_s13, %s234_s14  ;;  %p239_p3 = scmp.lt.s32.totalorder %s142_s13, %s142_s13 }
  0x2c   :  { %p240_p4 = scmp.lt.s32.totalorder %s238_s2, %s234_s14 }
  0x2d   :  { %166 = vmatpush3.bf16.msra.mxu0 %v183_v2 }
  0x2e   :  { %167 = vmatprep.subr.bf16.mxu0 %v266_v0  ;;  %p241_p5 = por %p240_p4, %p239_p3 }
  0x30   :  { %p242_p6 = pnand %p241_p5, %p235_p2 }
  0x31   :  { %168 = vmatpush3.bf16.msra.mxu0 %v184_v3 }
  0x32   :  { %169 = vmatprep.subr.bf16.mxu0 %v266_v0 }
  0x35   :  { %170 = vmatpush3.bf16.msra.mxu0 %v185_v4 }
  0x38   :  { %172 = vmatmul.mubr.msk.bf16.vlgmr.msra.gmra.mrb[0].mxu0 %vm82_vm1, %v42_v5 }
 0x10b   :  { %v120_v7 = vpop.f32.mrb[0].mxu0 }
 0x10c   :  { %v121_v8 = vadd.f32 %v151_v6, %v120_v7  ;;  %v173_v9 = vpop.f32.mrb[1].mxu0 }
 0x10d   :  { %v123_v10 = vpop.f32.mrb[2].mxu0 }
 0x10e   :  { %v157_v11 = vmul.f32 -1.442695, %v121_v8  ;;  %v174_v12 = vpop.f32.mrb[3].mxu0 }
 0x110   :  { %186 = vpow2.f32 %v157_v11 }
 0x11a   :  { %v187_v13 = vpop.eup %186 }
 0x11b   :  { %v129_v14 = vadd.f32 1.0, %v187_v13 }
 0x11d   :  { %188 = vrcp.f32 %v129_v14 }
 0x127   :  { %v189_v15 = vpop.eup %188 }
 0x128   :  { %v132_v16 = vmul.f32 %v189_v15, %v121_v8 }
 0x12a   :  { %v133_v17 = vpack.c.bf16 %v132_v16, %v132_v16 }
 0x12c   :  { %134 = vst [vmem:[#allocation7] sm:$0x1] %v133_v17 }
 0x12d   :  { %245 = shalt.err (!%p242_p6)
}
 0x12e   :  { %s246_s17 = scalar_lea.hbm %s338_s3, 16 }
 0x12f   :  { %p247_p7 = scmp.ne.s32.totalorder %s338_s3, %s246_s17  ;;  %p250_p8 = scmp.lt.u32.totalorder %s246_s17, %s338_s3 }
 0x131   :  { %p252_p9 = pnand %p250_p8, %p247_p7 }
 0x133   :  { %255 = shalt.err (!%p252_p9)
}
 0x134   :  { %144 = dma.vmem_to_hbm [thread:$0]  %s142_s13, 16, %s338_s3, [#allocation4]  }
 0x135   :  { %260 = dma.done.wait [#allocation4], 16  }
 0x136   :  { %261 = vsyncadd [#allocation4], 4294967280 }
 0x137   :  { %148 = vsyncpa [#allocation3], 1 }
 0x138   :  { %149 = vsyncpa [#allocation6], 1 }
 0x139   :  { %150 = vsyncpa [#allocation4], 1 }

</bundles_post_ra>
